<compile_context>
chip_gen: v7x
topology: tpu7x:2x2x1
jax: 0.10.0
libtpu: 0.0.40
codegen_flags: <defaults>
</compile_context>

<pallas_src>
import jax
import jax.numpy as jnp
from jax import lax
from jax.experimental import pallas as pl
from jax.experimental.pallas import tpu as pltpu


def sentiment_kernel(x_ref, s_ref, b_ref, o_ref):
    # x_ref: [tb, T] int32  token ids (natural layout, batch on sublanes)
    # s_ref: [V]     f32    folded weights  s[v] = sum_e emb[v, e] * w[e] (SMEM)
    # b_ref: [1]     f32    bias (SMEM scalar)
    # o_ref: [tb, 1] f32    sigmoid outputs
    x_tile = x_ref[...]
    tb, T = x_tile.shape
    V = s_ref.shape[0]

    def body(v, acc):
        # #{t : x[b, t] == v} per batch row, weighted by s[v]; the histogram
        # and the Linear weighting are fused into one [tb, 1] accumulator.
        cnt = jnp.sum((x_tile == v).astype(jnp.float32), axis=1, keepdims=True)
        return acc + cnt * s_ref[v]

    acc = lax.fori_loop(0, V, body, jnp.zeros((tb, 1), jnp.float32),
                        unroll=(V <= 64))

    # logit[b] = (1/T) * sum_t s[x[b, t]] + bias
    o_ref[...] = jax.nn.sigmoid(acc * (1.0 / T) + b_ref[0])


def _pick_batch_tile(B, T):
    if B <= 128:
        return B                       # whole (possibly ragged) batch, 1 step
    # >= 2 grid steps so v7x's second TensorCore gets work; sublane-aligned.
    tb = max(8, (pl.cdiv(B, 2) // 8) * 8)
    tb = min(tb, 1024)
    # Keep the double-buffered int32 token tile comfortably inside VMEM
    # (v7x only has 64 MiB): 2 * tb * T * 4 bytes <= 8 MiB.
    while tb > 8 and 2 * tb * T * 4 > (8 << 20):
        tb = max(8, ((tb // 2) // 8) * 8)
    return tb


def sentiment_forward(x, emb_table, w, b):
    B, T = x.shape
    V, E = emb_table.shape

    # Fold the 16 -> 1 Linear into the embedding table once (tiny XLA matmul).
    s = jnp.dot(emb_table.astype(jnp.float32),
                w.reshape(E).astype(jnp.float32))          # [V]
    b_s = b.reshape(1).astype(jnp.float32)                 # [1]
    x_i = x.astype(jnp.int32)                              # [B, T], no transpose

    tb = _pick_batch_tile(B, T)

    out = pl.pallas_call(
        sentiment_kernel,
        out_shape=jax.ShapeDtypeStruct((B, 1), jnp.float32),
        grid=(pl.cdiv(B, tb),),
        in_specs=[
            pl.BlockSpec((tb, T), lambda i: (i, 0)),
            pl.BlockSpec(memory_space=pltpu.MemorySpace.SMEM),
            pl.BlockSpec(memory_space=pltpu.MemorySpace.SMEM),
        ],
        out_specs=pl.BlockSpec((tb, 1), lambda i: (i, 0)),
        compiler_params=pltpu.CompilerParams(
            dimension_semantics=("parallel",)),
    )(x_i, s, b_s)

    return out                                             # [B, 1]


if __name__ == "__main__":
    # Small, deterministic setup consistent with the module.
    vocabulary_size = 32
    embed_dim = 16
    batch = 2
    seq_len = 8

    key = jax.random.PRNGKey(0)
    k_emb, k_w, k_b, k_x = jax.random.split(key, 4)

    # Deterministic parameter init mimicking PyTorch defaults:
    #   nn.Embedding -> N(0, 1); nn.Linear -> U(-1/sqrt(fan_in), 1/sqrt(fan_in))
    emb_table = jax.random.normal(k_emb, (vocabulary_size, embed_dim),
                                  dtype=jnp.float32)
    bound = 1.0 / jnp.sqrt(jnp.float32(embed_dim))
    w = jax.random.uniform(k_w, (embed_dim, 1), dtype=jnp.float32,
                           minval=-bound, maxval=bound)
    b = jax.random.uniform(k_b, (1,), dtype=jnp.float32,
                           minval=-bound, maxval=bound)

    # Integer token ids (assumed in [0, V), like nn.Embedding).
    x = jax.random.randint(k_x, (batch, seq_len), 0, vocabulary_size,
                           dtype=jnp.int32)

    out = sentiment_forward(x, emb_table, w, b)
    out = jax.block_until_ready(out)

    # Pure-JAX reference (elementwise, f32) — matches the module's forward.
    avg = jnp.mean(emb_table[x], axis=1)                               # [B, E]
    ref = jax.nn.sigmoid(jnp.sum(avg * w[:, 0], axis=-1, keepdims=True) + b)

    assert out.shape == (batch, 1)
    assert jnp.allclose(out, ref, atol=1e-5, rtol=1e-5), (out, ref)

    print("KERNEL_OK")
</pallas_src>

<mosaic_0001>
module attributes {stable_mosaic.version = 11 : i64} {
  func.func @sentiment_kernel(%arg0: i32, %arg1: memref<2x8xi32, #tpu.memory_space<vmem>>, %arg2: memref<32xf32, #tpu.memory_space<smem>>, %arg3: memref<1xf32, #tpu.memory_space<smem>>, %arg4: memref<2x1xf32, #tpu.memory_space<vmem>>) attributes {dimension_semantics = [#tpu.dimension_semantics<parallel>], iteration_bounds = array<i64: 1>, scalar_prefetch = 0 : i64, scratch_operands = 0 : i64, tpu.core_type = #tpu.core_type<tc>, window_params = [{transform_indices = @transform_0, window_bounds = array<i64: 2, 8>}, {transform_indices = @transform_1, window_bounds = array<i64: 32>}, {transform_indices = @transform_2, window_bounds = array<i64: 1>}, {transform_indices = @transform_3, window_bounds = array<i64: 2, 1>}]} {
    %c0 = arith.constant 0 : index
    %c0_0 = arith.constant 0 : index
    %0 = vector.load %arg1[%c0, %c0_0] : memref<2x8xi32, #tpu.memory_space<vmem>>, vector<2x8xi32>
    %cst = arith.constant 0.000000e+00 : f32
    %1 = vector.broadcast %cst : f32 to vector<2x1xf32>
    %c0_i32 = arith.constant 0 : i32
    %2 = vector.broadcast %c0_i32 : i32 to vector<2x8xi32>
    %3 = arith.cmpi eq, %0, %2 : vector<2x8xi32>
    %4 = arith.extui %3 : vector<2x8xi1> to vector<2x8xi32>
    %5 = arith.sitofp %4 : vector<2x8xi32> to vector<2x8xf32>
    %cst_1 = arith.constant dense<0.000000e+00> : vector<2xf32>
    %6 = vector.multi_reduction <add>, %5, %cst_1 [1] : vector<2x8xf32> to vector<2xf32>
    %7 = vector.shape_cast %6 : vector<2xf32> to vector<2x1xf32>
    %8 = arith.index_cast %c0_i32 : i32 to index
    %9 = memref.load %arg2[%8] : memref<32xf32, #tpu.memory_space<smem>>
    %10 = vector.broadcast %9 : f32 to vector<2x1xf32>
    %11 = arith.mulf %7, %10 : vector<2x1xf32>
    %12 = arith.addf %1, %11 : vector<2x1xf32>
    %c1_i32 = arith.constant 1 : i32
    %13 = vector.broadcast %c1_i32 : i32 to vector<2x8xi32>
    %14 = arith.cmpi eq, %0, %13 : vector<2x8xi32>
    %15 = arith.extui %14 : vector<2x8xi1> to vector<2x8xi32>
    %16 = arith.sitofp %15 : vector<2x8xi32> to vector<2x8xf32>
    %cst_2 = arith.constant dense<0.000000e+00> : vector<2xf32>
    %17 = vector.multi_reduction <add>, %16, %cst_2 [1] : vector<2x8xf32> to vector<2xf32>
    %18 = vector.shape_cast %17 : vector<2xf32> to vector<2x1xf32>
    %19 = arith.index_cast %c1_i32 : i32 to index
    %20 = memref.load %arg2[%19] : memref<32xf32, #tpu.memory_space<smem>>
    %21 = vector.broadcast %20 : f32 to vector<2x1xf32>
    %22 = arith.mulf %18, %21 : vector<2x1xf32>
    %23 = arith.addf %12, %22 : vector<2x1xf32>
    %c2_i32 = arith.constant 2 : i32
    %24 = vector.broadcast %c2_i32 : i32 to vector<2x8xi32>
    %25 = arith.cmpi eq, %0, %24 : vector<2x8xi32>
    %26 = arith.extui %25 : vector<2x8xi1> to vector<2x8xi32>
    %27 = arith.sitofp %26 : vector<2x8xi32> to vector<2x8xf32>
    %cst_3 = arith.constant dense<0.000000e+00> : vector<2xf32>
    %28 = vector.multi_reduction <add>, %27, %cst_3 [1] : vector<2x8xf32> to vector<2xf32>
    %29 = vector.shape_cast %28 : vector<2xf32> to vector<2x1xf32>
    %30 = arith.index_cast %c2_i32 : i32 to index
    %31 = memref.load %arg2[%30] : memref<32xf32, #tpu.memory_space<smem>>
    %32 = vector.broadcast %31 : f32 to vector<2x1xf32>
    %33 = arith.mulf %29, %32 : vector<2x1xf32>
    %34 = arith.addf %23, %33 : vector<2x1xf32>
    %c3_i32 = arith.constant 3 : i32
    %35 = vector.broadcast %c3_i32 : i32 to vector<2x8xi32>
    %36 = arith.cmpi eq, %0, %35 : vector<2x8xi32>
    %37 = arith.extui %36 : vector<2x8xi1> to vector<2x8xi32>
    %38 = arith.sitofp %37 : vector<2x8xi32> to vector<2x8xf32>
    %cst_4 = arith.constant dense<0.000000e+00> : vector<2xf32>
    %39 = vector.multi_reduction <add>, %38, %cst_4 [1] : vector<2x8xf32> to vector<2xf32>
    %40 = vector.shape_cast %39 : vector<2xf32> to vector<2x1xf32>
    %41 = arith.index_cast %c3_i32 : i32 to index
    %42 = memref.load %arg2[%41] : memref<32xf32, #tpu.memory_space<smem>>
    %43 = vector.broadcast %42 : f32 to vector<2x1xf32>
    %44 = arith.mulf %40, %43 : vector<2x1xf32>
    %45 = arith.addf %34, %44 : vector<2x1xf32>
    %c4_i32 = arith.constant 4 : i32
    %46 = vector.broadcast %c4_i32 : i32 to vector<2x8xi32>
    %47 = arith.cmpi eq, %0, %46 : vector<2x8xi32>
    %48 = arith.extui %47 : vector<2x8xi1> to vector<2x8xi32>
    %49 = arith.sitofp %48 : vector<2x8xi32> to vector<2x8xf32>
    %cst_5 = arith.constant dense<0.000000e+00> : vector<2xf32>
    %50 = vector.multi_reduction <add>, %49, %cst_5 [1] : vector<2x8xf32> to vector<2xf32>
    %51 = vector.shape_cast %50 : vector<2xf32> to vector<2x1xf32>
    %52 = arith.index_cast %c4_i32 : i32 to index
    %53 = memref.load %arg2[%52] : memref<32xf32, #tpu.memory_space<smem>>
    %54 = vector.broadcast %53 : f32 to vector<2x1xf32>
    %55 = arith.mulf %51, %54 : vector<2x1xf32>
    %56 = arith.addf %45, %55 : vector<2x1xf32>
    %c5_i32 = arith.constant 5 : i32
    %57 = vector.broadcast %c5_i32 : i32 to vector<2x8xi32>
    %58 = arith.cmpi eq, %0, %57 : vector<2x8xi32>
    %59 = arith.extui %58 : vector<2x8xi1> to vector<2x8xi32>
    %60 = arith.sitofp %59 : vector<2x8xi32> to vector<2x8xf32>
    %cst_6 = arith.constant dense<0.000000e+00> : vector<2xf32>
    %61 = vector.multi_reduction <add>, %60, %cst_6 [1] : vector<2x8xf32> to vector<2xf32>
    %62 = vector.shape_cast %61 : vector<2xf32> to vector<2x1xf32>
    %63 = arith.index_cast %c5_i32 : i32 to index
    %64 = memref.load %arg2[%63] : memref<32xf32, #tpu.memory_space<smem>>
    %65 = vector.broadcast %64 : f32 to vector<2x1xf32>
    %66 = arith.mulf %62, %65 : vector<2x1xf32>
    %67 = arith.addf %56, %66 : vector<2x1xf32>
    %c6_i32 = arith.constant 6 : i32
    %68 = vector.broadcast %c6_i32 : i32 to vector<2x8xi32>
    %69 = arith.cmpi eq, %0, %68 : vector<2x8xi32>
    %70 = arith.extui %69 : vector<2x8xi1> to vector<2x8xi32>
    %71 = arith.sitofp %70 : vector<2x8xi32> to vector<2x8xf32>
    %cst_7 = arith.constant dense<0.000000e+00> : vector<2xf32>
    %72 = vector.multi_reduction <add>, %71, %cst_7 [1] : vector<2x8xf32> to vector<2xf32>
    %73 = vector.shape_cast %72 : vector<2xf32> to vector<2x1xf32>
    %74 = arith.index_cast %c6_i32 : i32 to index
    %75 = memref.load %arg2[%74] : memref<32xf32, #tpu.memory_space<smem>>
    %76 = vector.broadcast %75 : f32 to vector<2x1xf32>
    %77 = arith.mulf %73, %76 : vector<2x1xf32>
    %78 = arith.addf %67, %77 : vector<2x1xf32>
    %c7_i32 = arith.constant 7 : i32
    %79 = vector.broadcast %c7_i32 : i32 to vector<2x8xi32>
    %80 = arith.cmpi eq, %0, %79 : vector<2x8xi32>
    %81 = arith.extui %80 : vector<2x8xi1> to vector<2x8xi32>
    %82 = arith.sitofp %81 : vector<2x8xi32> to vector<2x8xf32>
    %cst_8 = arith.constant dense<0.000000e+00> : vector<2xf32>
    %83 = vector.multi_reduction <add>, %82, %cst_8 [1] : vector<2x8xf32> to vector<2xf32>
    %84 = vector.shape_cast %83 : vector<2xf32> to vector<2x1xf32>
    %85 = arith.index_cast %c7_i32 : i32 to index
    %86 = memref.load %arg2[%85] : memref<32xf32, #tpu.memory_space<smem>>
    %87 = vector.broadcast %86 : f32 to vector<2x1xf32>
    %88 = arith.mulf %84, %87 : vector<2x1xf32>
    %89 = arith.addf %78, %88 : vector<2x1xf32>
    %c8_i32 = arith.constant 8 : i32
    %90 = vector.broadcast %c8_i32 : i32 to vector<2x8xi32>
    %91 = arith.cmpi eq, %0, %90 : vector<2x8xi32>
    %92 = arith.extui %91 : vector<2x8xi1> to vector<2x8xi32>
    %93 = arith.sitofp %92 : vector<2x8xi32> to vector<2x8xf32>
    %cst_9 = arith.constant dense<0.000000e+00> : vector<2xf32>
    %94 = vector.multi_reduction <add>, %93, %cst_9 [1] : vector<2x8xf32> to vector<2xf32>
    %95 = vector.shape_cast %94 : vector<2xf32> to vector<2x1xf32>
    %96 = arith.index_cast %c8_i32 : i32 to index
    %97 = memref.load %arg2[%96] : memref<32xf32, #tpu.memory_space<smem>>
    %98 = vector.broadcast %97 : f32 to vector<2x1xf32>
    %99 = arith.mulf %95, %98 : vector<2x1xf32>
    %100 = arith.addf %89, %99 : vector<2x1xf32>
    %c9_i32 = arith.constant 9 : i32
    %101 = vector.broadcast %c9_i32 : i32 to vector<2x8xi32>
    %102 = arith.cmpi eq, %0, %101 : vector<2x8xi32>
    %103 = arith.extui %102 : vector<2x8xi1> to vector<2x8xi32>
    %104 = arith.sitofp %103 : vector<2x8xi32> to vector<2x8xf32>
    %cst_10 = arith.constant dense<0.000000e+00> : vector<2xf32>
    %105 = vector.multi_reduction <add>, %104, %cst_10 [1] : vector<2x8xf32> to vector<2xf32>
    %106 = vector.shape_cast %105 : vector<2xf32> to vector<2x1xf32>
    %107 = arith.index_cast %c9_i32 : i32 to index
    %108 = memref.load %arg2[%107] : memref<32xf32, #tpu.memory_space<smem>>
    %109 = vector.broadcast %108 : f32 to vector<2x1xf32>
    %110 = arith.mulf %106, %109 : vector<2x1xf32>
    %111 = arith.addf %100, %110 : vector<2x1xf32>
    %c10_i32 = arith.constant 10 : i32
    %112 = vector.broadcast %c10_i32 : i32 to vector<2x8xi32>
    %113 = arith.cmpi eq, %0, %112 : vector<2x8xi32>
    %114 = arith.extui %113 : vector<2x8xi1> to vector<2x8xi32>
    %115 = arith.sitofp %114 : vector<2x8xi32> to vector<2x8xf32>
    %cst_11 = arith.constant dense<0.000000e+00> : vector<2xf32>
    %116 = vector.multi_reduction <add>, %115, %cst_11 [1] : vector<2x8xf32> to vector<2xf32>
    %117 = vector.shape_cast %116 : vector<2xf32> to vector<2x1xf32>
    %118 = arith.index_cast %c10_i32 : i32 to index
    %119 = memref.load %arg2[%118] : memref<32xf32, #tpu.memory_space<smem>>
    %120 = vector.broadcast %119 : f32 to vector<2x1xf32>
    %121 = arith.mulf %117, %120 : vector<2x1xf32>
    %122 = arith.addf %111, %121 : vector<2x1xf32>
    %c11_i32 = arith.constant 11 : i32
    %123 = vector.broadcast %c11_i32 : i32 to vector<2x8xi32>
    %124 = arith.cmpi eq, %0, %123 : vector<2x8xi32>
    %125 = arith.extui %124 : vector<2x8xi1> to vector<2x8xi32>
    %126 = arith.sitofp %125 : vector<2x8xi32> to vector<2x8xf32>
    %cst_12 = arith.constant dense<0.000000e+00> : vector<2xf32>
    %127 = vector.multi_reduction <add>, %126, %cst_12 [1] : vector<2x8xf32> to vector<2xf32>
    %128 = vector.shape_cast %127 : vector<2xf32> to vector<2x1xf32>
    %129 = arith.index_cast %c11_i32 : i32 to index
    %130 = memref.load %arg2[%129] : memref<32xf32, #tpu.memory_space<smem>>
    %131 = vector.broadcast %130 : f32 to vector<2x1xf32>
    %132 = arith.mulf %128, %131 : vector<2x1xf32>
    %133 = arith.addf %122, %132 : vector<2x1xf32>
    %c12_i32 = arith.constant 12 : i32
    %134 = vector.broadcast %c12_i32 : i32 to vector<2x8xi32>
    %135 = arith.cmpi eq, %0, %134 : vector<2x8xi32>
    %136 = arith.extui %135 : vector<2x8xi1> to vector<2x8xi32>
    %137 = arith.sitofp %136 : vector<2x8xi32> to vector<2x8xf32>
    %cst_13 = arith.constant dense<0.000000e+00> : vector<2xf32>
    %138 = vector.multi_reduction <add>, %137, %cst_13 [1] : vector<2x8xf32> to vector<2xf32>
    %139 = vector.shape_cast %138 : vector<2xf32> to vector<2x1xf32>
    %140 = arith.index_cast %c12_i32 : i32 to index
    %141 = memref.load %arg2[%140] : memref<32xf32, #tpu.memory_space<smem>>
    %142 = vector.broadcast %141 : f32 to vector<2x1xf32>
    %143 = arith.mulf %139, %142 : vector<2x1xf32>
    %144 = arith.addf %133, %143 : vector<2x1xf32>
    %c13_i32 = arith.constant 13 : i32
    %145 = vector.broadcast %c13_i32 : i32 to vector<2x8xi32>
    %146 = arith.cmpi eq, %0, %145 : vector<2x8xi32>
    %147 = arith.extui %146 : vector<2x8xi1> to vector<2x8xi32>
    %148 = arith.sitofp %147 : vector<2x8xi32> to vector<2x8xf32>
    %cst_14 = arith.constant dense<0.000000e+00> : vector<2xf32>
    %149 = vector.multi_reduction <add>, %148, %cst_14 [1] : vector<2x8xf32> to vector<2xf32>
    %150 = vector.shape_cast %149 : vector<2xf32> to vector<2x1xf32>
    %151 = arith.index_cast %c13_i32 : i32 to index
    %152 = memref.load %arg2[%151] : memref<32xf32, #tpu.memory_space<smem>>
    %153 = vector.broadcast %152 : f32 to vector<2x1xf32>
    %154 = arith.mulf %150, %153 : vector<2x1xf32>
    %155 = arith.addf %144, %154 : vector<2x1xf32>
    %c14_i32 = arith.constant 14 : i32
    %156 = vector.broadcast %c14_i32 : i32 to vector<2x8xi32>
    %157 = arith.cmpi eq, %0, %156 : vector<2x8xi32>
    %158 = arith.extui %157 : vector<2x8xi1> to vector<2x8xi32>
    %159 = arith.sitofp %158 : vector<2x8xi32> to vector<2x8xf32>
    %cst_15 = arith.constant dense<0.000000e+00> : vector<2xf32>
    %160 = vector.multi_reduction <add>, %159, %cst_15 [1] : vector<2x8xf32> to vector<2xf32>
    %161 = vector.shape_cast %160 : vector<2xf32> to vector<2x1xf32>
    %162 = arith.index_cast %c14_i32 : i32 to index
    %163 = memref.load %arg2[%162] : memref<32xf32, #tpu.memory_space<smem>>
    %164 = vector.broadcast %163 : f32 to vector<2x1xf32>
    %165 = arith.mulf %161, %164 : vector<2x1xf32>
    %166 = arith.addf %155, %165 : vector<2x1xf32>
    %c15_i32 = arith.constant 15 : i32
    %167 = vector.broadcast %c15_i32 : i32 to vector<2x8xi32>
    %168 = arith.cmpi eq, %0, %167 : vector<2x8xi32>
    %169 = arith.extui %168 : vector<2x8xi1> to vector<2x8xi32>
    %170 = arith.sitofp %169 : vector<2x8xi32> to vector<2x8xf32>
    %cst_16 = arith.constant dense<0.000000e+00> : vector<2xf32>
    %171 = vector.multi_reduction <add>, %170, %cst_16 [1] : vector<2x8xf32> to vector<2xf32>
    %172 = vector.shape_cast %171 : vector<2xf32> to vector<2x1xf32>
    %173 = arith.index_cast %c15_i32 : i32 to index
    %174 = memref.load %arg2[%173] : memref<32xf32, #tpu.memory_space<smem>>
    %175 = vector.broadcast %174 : f32 to vector<2x1xf32>
    %176 = arith.mulf %172, %175 : vector<2x1xf32>
    %177 = arith.addf %166, %176 : vector<2x1xf32>
    %c16_i32 = arith.constant 16 : i32
    %178 = vector.broadcast %c16_i32 : i32 to vector<2x8xi32>
    %179 = arith.cmpi eq, %0, %178 : vector<2x8xi32>
    %180 = arith.extui %179 : vector<2x8xi1> to vector<2x8xi32>
    %181 = arith.sitofp %180 : vector<2x8xi32> to vector<2x8xf32>
    %cst_17 = arith.constant dense<0.000000e+00> : vector<2xf32>
    %182 = vector.multi_reduction <add>, %181, %cst_17 [1] : vector<2x8xf32> to vector<2xf32>
    %183 = vector.shape_cast %182 : vector<2xf32> to vector<2x1xf32>
    %184 = arith.index_cast %c16_i32 : i32 to index
    %185 = memref.load %arg2[%184] : memref<32xf32, #tpu.memory_space<smem>>
    %186 = vector.broadcast %185 : f32 to vector<2x1xf32>
    %187 = arith.mulf %183, %186 : vector<2x1xf32>
    %188 = arith.addf %177, %187 : vector<2x1xf32>
    %c17_i32 = arith.constant 17 : i32
    %189 = vector.broadcast %c17_i32 : i32 to vector<2x8xi32>
    %190 = arith.cmpi eq, %0, %189 : vector<2x8xi32>
    %191 = arith.extui %190 : vector<2x8xi1> to vector<2x8xi32>
    %192 = arith.sitofp %191 : vector<2x8xi32> to vector<2x8xf32>
    %cst_18 = arith.constant dense<0.000000e+00> : vector<2xf32>
    %193 = vector.multi_reduction <add>, %192, %cst_18 [1] : vector<2x8xf32> to vector<2xf32>
    %194 = vector.shape_cast %193 : vector<2xf32> to vector<2x1xf32>
    %195 = arith.index_cast %c17_i32 : i32 to index
    %196 = memref.load %arg2[%195] : memref<32xf32, #tpu.memory_space<smem>>
    %197 = vector.broadcast %196 : f32 to vector<2x1xf32>
    %198 = arith.mulf %194, %197 : vector<2x1xf32>
    %199 = arith.addf %188, %198 : vector<2x1xf32>
    %c18_i32 = arith.constant 18 : i32
    %200 = vector.broadcast %c18_i32 : i32 to vector<2x8xi32>
    %201 = arith.cmpi eq, %0, %200 : vector<2x8xi32>
    %202 = arith.extui %201 : vector<2x8xi1> to vector<2x8xi32>
    %203 = arith.sitofp %202 : vector<2x8xi32> to vector<2x8xf32>
    %cst_19 = arith.constant dense<0.000000e+00> : vector<2xf32>
    %204 = vector.multi_reduction <add>, %203, %cst_19 [1] : vector<2x8xf32> to vector<2xf32>
    %205 = vector.shape_cast %204 : vector<2xf32> to vector<2x1xf32>
    %206 = arith.index_cast %c18_i32 : i32 to index
    %207 = memref.load %arg2[%206] : memref<32xf32, #tpu.memory_space<smem>>
    %208 = vector.broadcast %207 : f32 to vector<2x1xf32>
    %209 = arith.mulf %205, %208 : vector<2x1xf32>
    %210 = arith.addf %199, %209 : vector<2x1xf32>
    %c19_i32 = arith.constant 19 : i32
    %211 = vector.broadcast %c19_i32 : i32 to vector<2x8xi32>
    %212 = arith.cmpi eq, %0, %211 : vector<2x8xi32>
    %213 = arith.extui %212 : vector<2x8xi1> to vector<2x8xi32>
    %214 = arith.sitofp %213 : vector<2x8xi32> to vector<2x8xf32>
    %cst_20 = arith.constant dense<0.000000e+00> : vector<2xf32>
    %215 = vector.multi_reduction <add>, %214, %cst_20 [1] : vector<2x8xf32> to vector<2xf32>
    %216 = vector.shape_cast %215 : vector<2xf32> to vector<2x1xf32>
    %217 = arith.index_cast %c19_i32 : i32 to index
    %218 = memref.load %arg2[%217] : memref<32xf32, #tpu.memory_space<smem>>
    %219 = vector.broadcast %218 : f32 to vector<2x1xf32>
    %220 = arith.mulf %216, %219 : vector<2x1xf32>
    %221 = arith.addf %210, %220 : vector<2x1xf32>
    %c20_i32 = arith.constant 20 : i32
    %222 = vector.broadcast %c20_i32 : i32 to vector<2x8xi32>
    %223 = arith.cmpi eq, %0, %222 : vector<2x8xi32>
    %224 = arith.extui %223 : vector<2x8xi1> to vector<2x8xi32>
    %225 = arith.sitofp %224 : vector<2x8xi32> to vector<2x8xf32>
    %cst_21 = arith.constant dense<0.000000e+00> : vector<2xf32>
    %226 = vector.multi_reduction <add>, %225, %cst_21 [1] : vector<2x8xf32> to vector<2xf32>
    %227 = vector.shape_cast %226 : vector<2xf32> to vector<2x1xf32>
    %228 = arith.index_cast %c20_i32 : i32 to index
    %229 = memref.load %arg2[%228] : memref<32xf32, #tpu.memory_space<smem>>
    %230 = vector.broadcast %229 : f32 to vector<2x1xf32>
    %231 = arith.mulf %227, %230 : vector<2x1xf32>
    %232 = arith.addf %221, %231 : vector<2x1xf32>
    %c21_i32 = arith.constant 21 : i32
    %233 = vector.broadcast %c21_i32 : i32 to vector<2x8xi32>
    %234 = arith.cmpi eq, %0, %233 : vector<2x8xi32>
    %235 = arith.extui %234 : vector<2x8xi1> to vector<2x8xi32>
    %236 = arith.sitofp %235 : vector<2x8xi32> to vector<2x8xf32>
    %cst_22 = arith.constant dense<0.000000e+00> : vector<2xf32>
    %237 = vector.multi_reduction <add>, %236, %cst_22 [1] : vector<2x8xf32> to vector<2xf32>
    %238 = vector.shape_cast %237 : vector<2xf32> to vector<2x1xf32>
    %239 = arith.index_cast %c21_i32 : i32 to index
    %240 = memref.load %arg2[%239] : memref<32xf32, #tpu.memory_space<smem>>
    %241 = vector.broadcast %240 : f32 to vector<2x1xf32>
    %242 = arith.mulf %238, %241 : vector<2x1xf32>
    %243 = arith.addf %232, %242 : vector<2x1xf32>
    %c22_i32 = arith.constant 22 : i32
    %244 = vector.broadcast %c22_i32 : i32 to vector<2x8xi32>
    %245 = arith.cmpi eq, %0, %244 : vector<2x8xi32>
    %246 = arith.extui %245 : vector<2x8xi1> to vector<2x8xi32>
    %247 = arith.sitofp %246 : vector<2x8xi32> to vector<2x8xf32>
    %cst_23 = arith.constant dense<0.000000e+00> : vector<2xf32>
    %248 = vector.multi_reduction <add>, %247, %cst_23 [1] : vector<2x8xf32> to vector<2xf32>
    %249 = vector.shape_cast %248 : vector<2xf32> to vector<2x1xf32>
    %250 = arith.index_cast %c22_i32 : i32 to index
    %251 = memref.load %arg2[%250] : memref<32xf32, #tpu.memory_space<smem>>
    %252 = vector.broadcast %251 : f32 to vector<2x1xf32>
    %253 = arith.mulf %249, %252 : vector<2x1xf32>
    %254 = arith.addf %243, %253 : vector<2x1xf32>
    %c23_i32 = arith.constant 23 : i32
    %255 = vector.broadcast %c23_i32 : i32 to vector<2x8xi32>
    %256 = arith.cmpi eq, %0, %255 : vector<2x8xi32>
    %257 = arith.extui %256 : vector<2x8xi1> to vector<2x8xi32>
    %258 = arith.sitofp %257 : vector<2x8xi32> to vector<2x8xf32>
    %cst_24 = arith.constant dense<0.000000e+00> : vector<2xf32>
    %259 = vector.multi_reduction <add>, %258, %cst_24 [1] : vector<2x8xf32> to vector<2xf32>
    %260 = vector.shape_cast %259 : vector<2xf32> to vector<2x1xf32>
    %261 = arith.index_cast %c23_i32 : i32 to index
    %262 = memref.load %arg2[%261] : memref<32xf32, #tpu.memory_space<smem>>
    %263 = vector.broadcast %262 : f32 to vector<2x1xf32>
    %264 = arith.mulf %260, %263 : vector<2x1xf32>
    %265 = arith.addf %254, %264 : vector<2x1xf32>
    %c24_i32 = arith.constant 24 : i32
    %266 = vector.broadcast %c24_i32 : i32 to vector<2x8xi32>
    %267 = arith.cmpi eq, %0, %266 : vector<2x8xi32>
    %268 = arith.extui %267 : vector<2x8xi1> to vector<2x8xi32>
    %269 = arith.sitofp %268 : vector<2x8xi32> to vector<2x8xf32>
    %cst_25 = arith.constant dense<0.000000e+00> : vector<2xf32>
    %270 = vector.multi_reduction <add>, %269, %cst_25 [1] : vector<2x8xf32> to vector<2xf32>
    %271 = vector.shape_cast %270 : vector<2xf32> to vector<2x1xf32>
    %272 = arith.index_cast %c24_i32 : i32 to index
    %273 = memref.load %arg2[%272] : memref<32xf32, #tpu.memory_space<smem>>
    %274 = vector.broadcast %273 : f32 to vector<2x1xf32>
    %275 = arith.mulf %271, %274 : vector<2x1xf32>
    %276 = arith.addf %265, %275 : vector<2x1xf32>
    %c25_i32 = arith.constant 25 : i32
    %277 = vector.broadcast %c25_i32 : i32 to vector<2x8xi32>
    %278 = arith.cmpi eq, %0, %277 : vector<2x8xi32>
    %279 = arith.extui %278 : vector<2x8xi1> to vector<2x8xi32>
    %280 = arith.sitofp %279 : vector<2x8xi32> to vector<2x8xf32>
    %cst_26 = arith.constant dense<0.000000e+00> : vector<2xf32>
    %281 = vector.multi_reduction <add>, %280, %cst_26 [1] : vector<2x8xf32> to vector<2xf32>
    %282 = vector.shape_cast %281 : vector<2xf32> to vector<2x1xf32>
    %283 = arith.index_cast %c25_i32 : i32 to index
    %284 = memref.load %arg2[%283] : memref<32xf32, #tpu.memory_space<smem>>
    %285 = vector.broadcast %284 : f32 to vector<2x1xf32>
    %286 = arith.mulf %282, %285 : vector<2x1xf32>
    %287 = arith.addf %276, %286 : vector<2x1xf32>
    %c26_i32 = arith.constant 26 : i32
    %288 = vector.broadcast %c26_i32 : i32 to vector<2x8xi32>
    %289 = arith.cmpi eq, %0, %288 : vector<2x8xi32>
    %290 = arith.extui %289 : vector<2x8xi1> to vector<2x8xi32>
    %291 = arith.sitofp %290 : vector<2x8xi32> to vector<2x8xf32>
    %cst_27 = arith.constant dense<0.000000e+00> : vector<2xf32>
    %292 = vector.multi_reduction <add>, %291, %cst_27 [1] : vector<2x8xf32> to vector<2xf32>
    %293 = vector.shape_cast %292 : vector<2xf32> to vector<2x1xf32>
    %294 = arith.index_cast %c26_i32 : i32 to index
    %295 = memref.load %arg2[%294] : memref<32xf32, #tpu.memory_space<smem>>
    %296 = vector.broadcast %295 : f32 to vector<2x1xf32>
    %297 = arith.mulf %293, %296 : vector<2x1xf32>
    %298 = arith.addf %287, %297 : vector<2x1xf32>
    %c27_i32 = arith.constant 27 : i32
    %299 = vector.broadcast %c27_i32 : i32 to vector<2x8xi32>
    %300 = arith.cmpi eq, %0, %299 : vector<2x8xi32>
    %301 = arith.extui %300 : vector<2x8xi1> to vector<2x8xi32>
    %302 = arith.sitofp %301 : vector<2x8xi32> to vector<2x8xf32>
    %cst_28 = arith.constant dense<0.000000e+00> : vector<2xf32>
    %303 = vector.multi_reduction <add>, %302, %cst_28 [1] : vector<2x8xf32> to vector<2xf32>
    %304 = vector.shape_cast %303 : vector<2xf32> to vector<2x1xf32>
    %305 = arith.index_cast %c27_i32 : i32 to index
    %306 = memref.load %arg2[%305] : memref<32xf32, #tpu.memory_space<smem>>
    %307 = vector.broadcast %306 : f32 to vector<2x1xf32>
    %308 = arith.mulf %304, %307 : vector<2x1xf32>
    %309 = arith.addf %298, %308 : vector<2x1xf32>
    %c28_i32 = arith.constant 28 : i32
    %310 = vector.broadcast %c28_i32 : i32 to vector<2x8xi32>
    %311 = arith.cmpi eq, %0, %310 : vector<2x8xi32>
    %312 = arith.extui %311 : vector<2x8xi1> to vector<2x8xi32>
    %313 = arith.sitofp %312 : vector<2x8xi32> to vector<2x8xf32>
    %cst_29 = arith.constant dense<0.000000e+00> : vector<2xf32>
    %314 = vector.multi_reduction <add>, %313, %cst_29 [1] : vector<2x8xf32> to vector<2xf32>
    %315 = vector.shape_cast %314 : vector<2xf32> to vector<2x1xf32>
    %316 = arith.index_cast %c28_i32 : i32 to index
    %317 = memref.load %arg2[%316] : memref<32xf32, #tpu.memory_space<smem>>
    %318 = vector.broadcast %317 : f32 to vector<2x1xf32>
    %319 = arith.mulf %315, %318 : vector<2x1xf32>
    %320 = arith.addf %309, %319 : vector<2x1xf32>
    %c29_i32 = arith.constant 29 : i32
    %321 = vector.broadcast %c29_i32 : i32 to vector<2x8xi32>
    %322 = arith.cmpi eq, %0, %321 : vector<2x8xi32>
    %323 = arith.extui %322 : vector<2x8xi1> to vector<2x8xi32>
    %324 = arith.sitofp %323 : vector<2x8xi32> to vector<2x8xf32>
    %cst_30 = arith.constant dense<0.000000e+00> : vector<2xf32>
    %325 = vector.multi_reduction <add>, %324, %cst_30 [1] : vector<2x8xf32> to vector<2xf32>
    %326 = vector.shape_cast %325 : vector<2xf32> to vector<2x1xf32>
    %327 = arith.index_cast %c29_i32 : i32 to index
    %328 = memref.load %arg2[%327] : memref<32xf32, #tpu.memory_space<smem>>
    %329 = vector.broadcast %328 : f32 to vector<2x1xf32>
    %330 = arith.mulf %326, %329 : vector<2x1xf32>
    %331 = arith.addf %320, %330 : vector<2x1xf32>
    %c30_i32 = arith.constant 30 : i32
    %332 = vector.broadcast %c30_i32 : i32 to vector<2x8xi32>
    %333 = arith.cmpi eq, %0, %332 : vector<2x8xi32>
    %334 = arith.extui %333 : vector<2x8xi1> to vector<2x8xi32>
    %335 = arith.sitofp %334 : vector<2x8xi32> to vector<2x8xf32>
    %cst_31 = arith.constant dense<0.000000e+00> : vector<2xf32>
    %336 = vector.multi_reduction <add>, %335, %cst_31 [1] : vector<2x8xf32> to vector<2xf32>
    %337 = vector.shape_cast %336 : vector<2xf32> to vector<2x1xf32>
    %338 = arith.index_cast %c30_i32 : i32 to index
    %339 = memref.load %arg2[%338] : memref<32xf32, #tpu.memory_space<smem>>
    %340 = vector.broadcast %339 : f32 to vector<2x1xf32>
    %341 = arith.mulf %337, %340 : vector<2x1xf32>
    %342 = arith.addf %331, %341 : vector<2x1xf32>
    %c31_i32 = arith.constant 31 : i32
    %343 = vector.broadcast %c31_i32 : i32 to vector<2x8xi32>
    %344 = arith.cmpi eq, %0, %343 : vector<2x8xi32>
    %345 = arith.extui %344 : vector<2x8xi1> to vector<2x8xi32>
    %346 = arith.sitofp %345 : vector<2x8xi32> to vector<2x8xf32>
    %cst_32 = arith.constant dense<0.000000e+00> : vector<2xf32>
    %347 = vector.multi_reduction <add>, %346, %cst_32 [1] : vector<2x8xf32> to vector<2xf32>
    %348 = vector.shape_cast %347 : vector<2xf32> to vector<2x1xf32>
    %349 = arith.index_cast %c31_i32 : i32 to index
    %350 = memref.load %arg2[%349] : memref<32xf32, #tpu.memory_space<smem>>
    %351 = vector.broadcast %350 : f32 to vector<2x1xf32>
    %352 = arith.mulf %348, %351 : vector<2x1xf32>
    %353 = arith.addf %342, %352 : vector<2x1xf32>
    %c32_i32 = arith.constant 32 : i32
    %cst_33 = arith.constant 1.250000e-01 : f32
    %354 = vector.broadcast %cst_33 : f32 to vector<2x1xf32>
    %355 = arith.mulf %353, %354 : vector<2x1xf32>
    %c0_34 = arith.constant 0 : index
    %356 = memref.load %arg3[%c0_34] : memref<1xf32, #tpu.memory_space<smem>>
    %357 = vector.broadcast %356 : f32 to vector<2x1xf32>
    %358 = arith.addf %355, %357 : vector<2x1xf32>
    %359 = arith.negf %358 : vector<2x1xf32>
    %360 = math.exp %359 : vector<2x1xf32>
    %cst_35 = arith.constant 1.000000e+00 : f32
    %361 = vector.broadcast %cst_35 : f32 to vector<2x1xf32>
    %362 = arith.addf %361, %360 : vector<2x1xf32>
    %363 = arith.divf %361, %362 : vector<2x1xf32>
    %c0_36 = arith.constant 0 : index
    %c0_37 = arith.constant 0 : index
    %364 = vector.load %arg4[%c0_36, %c0_37] : memref<2x1xf32, #tpu.memory_space<vmem>>, vector<2x1xf32>
    tpu.vector_store %arg4[%c0_36, %c0_37], %363 {strides = array<i32>} : memref<2x1xf32, #tpu.memory_space<vmem>>, vector<2x1xf32>,
    return
  }
  func.func @transform_0(%arg0: i32) -> (i32, i32) {
    %c0_i32 = arith.constant 0 : i32
    %c0_i32_0 = arith.constant 0 : i32
    return %arg0, %c0_i32 : i32, i32
  }
  func.func @transform_1(%arg0: i32) -> i32 {
    %c0_i32 = arith.constant 0 : i32
    %c0_i32_0 = arith.constant 0 : i32
    return %c0_i32 : i32
  }
  func.func @transform_2(%arg0: i32) -> i32 {
    %c0_i32 = arith.constant 0 : i32
    %c0_i32_0 = arith.constant 0 : i32
    return %c0_i32 : i32
  }
  func.func @transform_3(%arg0: i32) -> (i32, i32) {
    %c0_i32 = arith.constant 0 : i32
    %c0_i32_0 = arith.constant 0 : i32
    return %arg0, %c0_i32 : i32, i32
  }
}

</mosaic_0001>

<bundles_post_ra>
// kernel: tpu_custom_call.1
= control target key start
LH: loop header
LB: loop body
LE: loop exit
PB: predicated region body
PF: predicated region fallthrough
CT: control target
= control target key end

     0   :  { %9 = vsyncpa [#allocation4], 0  ;;  %s583_s0 = inlined_call_operand.vmem [shape: s32[2,8], index: 0, kind: input, shape index: {}]   ;;  %s584_s1 = inlined_call_operand.vmem [shape: f32[32], index: 1, kind: input, shape index: {}]   ;;  %s585_s2 = inlined_call_operand.<no memory space> [shape: f32[1], index: 2, kind: input, shape index: {}]   ;;  %s586_s3 = inlined_call_operand.vmem [shape: f32[2,1], index: 3, kind: output, shape index: {}]  }
   0x1   :  { %s18_s14 = sshll.u32 %s584_s1, 4  ;;  %s19_s14 = int_to_ptr.vmem [resolvable:$true] %s18_s14 }
   0x2   :  { %s437_s15 = scalar_lea.vmem %s19_s14, 16  ;;  %p442_p1 = scmp.lt.s32.totalorder %s19_s14, %s19_s14 }
   0x3   :  { %p438_p0 = scmp.ne.s32.totalorder %s19_s14, %s437_s15  ;;  %p443_p2 = scmp.lt.s32.totalorder %s437_s15, %s437_s15 }
   0x5   :  { %p444_p3 = por %p443_p2, %p442_p1 }
   0x7   :  { %p445_p4 = pnand %p444_p3, %p438_p0 }
   0x9   :  { %448 = shalt.err (!%p445_p4)
}
   0xa   :  { %s451_s16 = smov [#allocation3]  }
   0xb   :  { %21 = dma.vmem_to_smem %s19_s14, 16, %s451_s16, [#allocation4]  }
   0xc   :  { %449 = dma.done.wait [#allocation4], 16  }
   0xd   :  { %450 = vsyncadd [#allocation4], 4294967280 }
   0xe   :  { %27 = sfence }
   0xf   :  { %v479_v0 = vld [vmem:[%s583_s0] sm:$0x3]  ;;  %vm32_vm0 = vcmask 58368   ;;  %v452_v1 = vmov 0.0   ;;  %s36_s0 = sld [smem:[#allocation3]]  ;;  %s369_s1 = sld [smem:[#allocation3 + $0x1]] }
  0x10   :  { %vm29_vm1 = vcmp.eq.s32.totalorder %v479_v0, 0  ;;  %vm50_vm2 = vcmp.eq.s32.totalorder %v479_v0, 2  ;;  %vm40_vm3 = vcmp.eq.s32.totalorder %v479_v0, 1  ;;  %vm60_vm4 = vcmp.eq.s32.totalorder %v479_v0, 3  ;;  %s371_s19 = sld [smem:[#allocation3 + $0x2]]  ;;  %s373_s20 = sld [smem:[#allocation3 + $0x3]] }
  0x11   :  { %v367_v2 = vsel %vm29_vm1, 1.0, %v452_v1  ;;  %v370_v3 = vsel %vm50_vm2, 1.0, %v452_v1  ;;  %v368_v4 = vsel %vm40_vm3, 1.0, %v452_v1  ;;  %v372_v5 = vsel %vm60_vm4, 1.0, %v452_v1  ;;  %s375_s21 = sld [smem:[#allocation3 + $0x4]]  ;;  %s377_s22 = sld [smem:[#allocation3 + $0x5]] }
  0x12   :  { %v33_v6 = vsel %vm32_vm0, %v367_v2, 0.0  ;;  %v53_v7 = vsel %vm32_vm0, %v370_v3, 0.0  ;;  %vm70_vm5 = vcmp.eq.s32.totalorder %v479_v0, 4  ;;  %vm80_vm6 = vcmp.eq.s32.totalorder %v479_v0, 5  ;;  %s379_s23 = sld [smem:[#allocation3 + $0x6]]  ;;  %s381_s24 = sld [smem:[#allocation3 + $0x7]] }
  0x13   :  { %34 = vadd.xlane.f32.xlu0 %v33_v6  ;;  %54 = vadd.xlane.f32.xlu1 %v53_v7  ;;  %v43_v8 = vsel %vm32_vm0, %v368_v4, 0.0  ;;  %v63_v9 = vsel %vm32_vm0, %v372_v5, 0.0  ;;  %v374_v10 = vsel %vm70_vm5, 1.0, %v452_v1  ;;  %v376_v11 = vsel %vm80_vm6, 1.0, %v452_v1  ;;  %s383_s25 = sld [smem:[#allocation3 + $0x8]]  ;;  %s385_s26 = sld [smem:[#allocation3 + $0x9]] }
  0x14   :  { %vm90_vm7 = vcmp.eq.s32.totalorder %v479_v0, 6  ;;  %vm100_vm8 = vcmp.eq.s32.totalorder %v479_v0, 7  ;;  %v73_v12 = vsel %vm32_vm0, %v374_v10, 0.0  ;;  %v83_v13 = vsel %vm32_vm0, %v376_v11, 0.0  ;;  %s387_s27 = sld [smem:[#allocation3 + $0xa]]  ;;  %s389_s28 = sld [smem:[#allocation3 + $0xb]] }
  0x15   :  { %v378_v14 = vsel %vm90_vm7, 1.0, %v452_v1  ;;  %v380_v15 = vsel %vm100_vm8, 1.0, %v452_v1  ;;  %vm110_vm9 = vcmp.eq.s32.totalorder %v479_v0, 8  ;;  %vm120_vm10 = vcmp.eq.s32.totalorder %v479_v0, 9  ;;  %s391_s29 = sld [smem:[#allocation3 + $0xc]]  ;;  %s393_s30 = sld [smem:[#allocation3 + $0xd]] }
  0x16   :  { %v93_v16 = vsel %vm32_vm0, %v378_v14, 0.0  ;;  %v103_v17 = vsel %vm32_vm0, %v380_v15, 0.0  ;;  %v382_v18 = vsel %vm110_vm9, 1.0, %v452_v1  ;;  %v384_v19 = vsel %vm120_vm10, 1.0, %v452_v1  ;;  %s395_s4 = sld [smem:[#allocation3 + $0xe]]  ;;  %s397_s5 = sld [smem:[#allocation3 + $0xf]] }
  0x17   :  { %44 = vadd.xlane.f32.xlu0 %v43_v8  ;;  %64 = vadd.xlane.f32.xlu1 %v63_v9  ;;  %vm130_vm11 = vcmp.eq.s32.totalorder %v479_v0, 10  ;;  %vm140_vm12 = vcmp.eq.s32.totalorder %v479_v0, 11  ;;  %v113_v20 = vsel %vm32_vm0, %v382_v18, 0.0  ;;  %v123_v21 = vsel %vm32_vm0, %v384_v19, 0.0  ;;  %s399_s6 = sld [smem:[#allocation3 + $0x10]]  ;;  %s401_s7 = sld [smem:[#allocation3 + $0x11]] }
  0x18   :  { %v386_v22 = vsel %vm130_vm11, 1.0, %v452_v1  ;;  %v388_v23 = vsel %vm140_vm12, 1.0, %v452_v1  ;;  %vm150_vm13 = vcmp.eq.s32.totalorder %v479_v0, 12  ;;  %vm160_vm14 = vcmp.eq.s32.totalorder %v479_v0, 13  ;;  %s403_s8 = sld [smem:[#allocation3 + $0x12]]  ;;  %s405_s9 = sld [smem:[#allocation3 + $0x13]] }
  0x19   :  { %v133_v24 = vsel %vm32_vm0, %v386_v22, 0.0  ;;  %v143_v25 = vsel %vm32_vm0, %v388_v23, 0.0  ;;  %v390_v26 = vsel %vm150_vm13, 1.0, %v452_v1  ;;  %v392_v27 = vsel %vm160_vm14, 1.0, %v452_v1  ;;  %s407_s10 = sld [smem:[#allocation3 + $0x14]]  ;;  %s409_s11 = sld [smem:[#allocation3 + $0x15]] }
  0x1a   :  { %vm170_vm15 = vcmp.eq.s32.totalorder %v479_v0, 14  ;;  %vm180_vm1 = vcmp.eq.s32.totalorder %v479_v0, 15  ;;  %v153_v28 = vsel %vm32_vm0, %v390_v26, 0.0  ;;  %v163_v29 = vsel %vm32_vm0, %v392_v27, 0.0  ;;  %s411_s12 = sld [smem:[#allocation3 + $0x16]]  ;;  %s413_s13 = sld [smem:[#allocation3 + $0x17]] }
  0x1b   :  { %74 = vadd.xlane.f32.xlu0 %v73_v12  ;;  %84 = vadd.xlane.f32.xlu1 %v83_v13  ;;  %v394_v30 = vsel %vm170_vm15, 1.0, %v452_v1  ;;  %v396_v31 = vsel %vm180_vm1, 1.0, %v452_v1  ;;  %vm190_vm2 = vcmp.eq.s32.totalorder %v479_v0, 16  ;;  %vm200_vm3 = vcmp.eq.s32.totalorder %v479_v0, 17  ;;  %s415_s14 = sld [smem:[#allocation3 + $0x18]]  ;;  %s417_s15 = sld [smem:[#allocation3 + $0x19]] }
  0x1c   :  { %v173_v32 = vsel %vm32_vm0, %v394_v30, 0.0  ;;  %v183_v33 = vsel %vm32_vm0, %v396_v31, 0.0  ;;  %v398_v34 = vsel %vm190_vm2, 1.0, %v452_v1  ;;  %v400_v35 = vsel %vm200_vm3, 1.0, %v452_v1  ;;  %s419_s16 = sld [smem:[#allocation3 + $0x1a]]  ;;  %s421_s17 = sld [smem:[#allocation3 + $0x1b]] }
  0x1d   :  { %vm210_vm4 = vcmp.eq.s32.totalorder %v479_v0, 18  ;;  %vm220_vm5 = vcmp.eq.s32.totalorder %v479_v0, 19  ;;  %v193_v36 = vsel %vm32_vm0, %v398_v34, 0.0  ;;  %v203_v37 = vsel %vm32_vm0, %v400_v35, 0.0  ;;  %s423_s18 = sld [smem:[#allocation3 + $0x1c]] }
  0x1e   :  { %v402_v38 = vsel %vm210_vm4, 1.0, %v452_v1  ;;  %v404_v39 = vsel %vm220_vm5, 1.0, %v452_v1  ;;  %vm230_vm6 = vcmp.eq.s32.totalorder %v479_v0, 20  ;;  %vm240_vm7 = vcmp.eq.s32.totalorder %v479_v0, 21 }
  0x1f   :  { %94 = vadd.xlane.f32.xlu0 %v93_v16  ;;  %104 = vadd.xlane.f32.xlu1 %v103_v17  ;;  %v213_v40 = vsel %vm32_vm0, %v402_v38, 0.0  ;;  %v223_v41 = vsel %vm32_vm0, %v404_v39, 0.0  ;;  %v406_v42 = vsel %vm230_vm6, 1.0, %v452_v1  ;;  %v408_v43 = vsel %vm240_vm7, 1.0, %v452_v1 }
  0x20   :  { %vm250_vm8 = vcmp.eq.s32.totalorder %v479_v0, 22  ;;  %vm260_vm9 = vcmp.eq.s32.totalorder %v479_v0, 23  ;;  %v233_v44 = vsel %vm32_vm0, %v406_v42, 0.0  ;;  %v243_v45 = vsel %vm32_vm0, %v408_v43, 0.0 }
  0x21   :  { %v410_v46 = vsel %vm250_vm8, 1.0, %v452_v1  ;;  %v412_v47 = vsel %vm260_vm9, 1.0, %v452_v1  ;;  %vm270_vm10 = vcmp.eq.s32.totalorder %v479_v0, 24  ;;  %vm280_vm11 = vcmp.eq.s32.totalorder %v479_v0, 25 }
  0x22   :  { %v253_v48 = vsel %vm32_vm0, %v410_v46, 0.0  ;;  %v263_v49 = vsel %vm32_vm0, %v412_v47, 0.0  ;;  %v414_v50 = vsel %vm270_vm10, 1.0, %v452_v1  ;;  %v416_v51 = vsel %vm280_vm11, 1.0, %v452_v1 }
  0x23   :  { %114 = vadd.xlane.f32.xlu0 %v113_v20  ;;  %124 = vadd.xlane.f32.xlu1 %v123_v21  ;;  %vm290_vm12 = vcmp.eq.s32.totalorder %v479_v0, 26  ;;  %vm300_vm13 = vcmp.eq.s32.totalorder %v479_v0, 27  ;;  %v273_v52 = vsel %vm32_vm0, %v414_v50, 0.0  ;;  %v283_v53 = vsel %vm32_vm0, %v416_v51, 0.0 }
  0x24   :  { %v418_v54 = vsel %vm290_vm12, 1.0, %v452_v1  ;;  %v420_v55 = vsel %vm300_vm13, 1.0, %v452_v1  ;;  %vm310_vm14 = vcmp.eq.s32.totalorder %v479_v0, 28  ;;  %vm320_vm15 = vcmp.eq.s32.totalorder %v479_v0, 29 }
  0x25   :  { %v293_v56 = vsel %vm32_vm0, %v418_v54, 0.0  ;;  %v303_v57 = vsel %vm32_vm0, %v420_v55, 0.0  ;;  %v422_v58 = vsel %vm310_vm14, 1.0, %v452_v1  ;;  %v424_v59 = vsel %vm320_vm15, 1.0, %v452_v1 }
  0x26   :  { %vm330_vm1 = vcmp.eq.s32.totalorder %v479_v0, 30  ;;  %vm340_vm2 = vcmp.eq.s32.totalorder %v479_v0, 31  ;;  %v313_v60 = vsel %vm32_vm0, %v422_v58, 0.0  ;;  %v323_v61 = vsel %vm32_vm0, %v424_v59, 0.0 }
  0x27   :  { %134 = vadd.xlane.f32.xlu0 %v133_v24  ;;  %144 = vadd.xlane.f32.xlu1 %v143_v25  ;;  %v426_v62 = vsel %vm330_vm1, 1.0, %v452_v1  ;;  %v428_v63 = vsel %vm340_vm2, 1.0, %v452_v1  ;;  %v37_v5 = vstv %s36_s0  ;;  %v47_v6 = vstv %s369_s1  ;;  %s425_s0 = sld [smem:[#allocation3 + $0x1d]]  ;;  %s427_s1 = sld [smem:[#allocation3 + $0x1e]] }
  0x28   :  { %v333_v2 = vsel %vm32_vm0, %v426_v62, 0.0  ;;  %v343_v3 = vsel %vm32_vm0, %v428_v63, 0.0  ;;  %v57_v1 = vstv %s371_s19  ;;  %v67_v8 = vstv %s373_s20  ;;  %s429_s19 = sld [smem:[#allocation3 + $0x1f]] }
  0x29   :  { %v77_v12 = vstv %s375_s21  ;;  %v87_v17 = vstv %s377_s22  ;;  %v97_v21 = vstv %s379_s23  ;;  %v107_v25 = vstv %s381_s24 }
  0x2a   :  { %vm360_vm0 = vcmask 1024  }
  0x2b   :  { %154 = vadd.xlane.f32.xlu0 %v153_v28  ;;  %164 = vadd.xlane.f32.xlu1 %v163_v29  ;;  %v117_v29 = vstv %s383_s25 }
  0x2f   :  { %174 = vadd.xlane.f32.xlu0 %v173_v32  ;;  %184 = vadd.xlane.f32.xlu1 %v183_v33  ;;  %v127_v33 = vstv %s385_s26 }
  0x33   :  { %194 = vadd.xlane.f32.xlu0 %v193_v36  ;;  %204 = vadd.xlane.f32.xlu1 %v203_v37  ;;  %v137_v37 = vstv %s387_s27 }
  0x37   :  { %214 = vadd.xlane.f32.xlu0 %v213_v40  ;;  %224 = vadd.xlane.f32.xlu1 %v223_v41  ;;  %v147_v41 = vstv %s389_s28 }
  0x3b   :  { %234 = vadd.xlane.f32.xlu0 %v233_v44  ;;  %244 = vadd.xlane.f32.xlu1 %v243_v45  ;;  %v157_v45 = vstv %s391_s29 }
  0x3f   :  { %254 = vadd.xlane.f32.xlu0 %v253_v48  ;;  %264 = vadd.xlane.f32.xlu1 %v263_v49  ;;  %v167_v49 = vstv %s393_s30 }
  0x43   :  { %274 = vadd.xlane.f32.xlu0 %v273_v52  ;;  %284 = vadd.xlane.f32.xlu1 %v283_v53  ;;  %v177_v53 = vstv %s395_s4 }
  0x47   :  { %294 = vadd.xlane.f32.xlu0 %v293_v56  ;;  %304 = vadd.xlane.f32.xlu1 %v303_v57  ;;  %v187_v57 = vstv %s397_s5 }
  0x4b   :  { %314 = vadd.xlane.f32.xlu0 %v313_v60  ;;  %324 = vadd.xlane.f32.xlu1 %v323_v61  ;;  %v197_v61 = vstv %s399_s6 }
  0x4f   :  { %334 = vadd.xlane.f32.xlu0 %v333_v2  ;;  %344 = vadd.xlane.f32.xlu1 %v343_v3  ;;  %v207_v3 = vstv %s401_s7 }
  0xa0   :  { %v35_v0 = vpop.xlane.xlu0 %34  ;;  %v55_v4 = vpop.xlane.xlu1 %54 }
  0xa1   :  { %v38_v10 = vmul.f32 %v37_v5, %v35_v0  ;;  %v58_v13 = vmul.f32 %v57_v1, %v55_v4 }
  0xa4   :  { %v45_v7 = vpop.xlane.xlu0 %44  ;;  %v65_v9 = vpop.xlane.xlu1 %64 }
  0xa5   :  { %v48_v11 = vmul.f32 %v47_v6, %v45_v7  ;;  %v68_v15 = vmul.f32 %v67_v8, %v65_v9  ;;  %v217_v6 = vstv %s403_s8  ;;  %v227_v9 = vstv %s405_s9 }
  0xa7   :  { %v49_v14 = vadd.f32 %v48_v11, %v38_v10 }
  0xa8   :  { %v75_v16 = vpop.xlane.xlu0 %74  ;;  %v85_v18 = vpop.xlane.xlu1 %84 }
  0xa9   :  { %v59_v19 = vadd.f32 %v58_v13, %v49_v14  ;;  %v78_v20 = vmul.f32 %v77_v12, %v75_v16  ;;  %v88_v23 = vmul.f32 %v87_v17, %v85_v18  ;;  %v237_v13 = vstv %s407_s10 }
  0xaa   :  { %v247_v17 = vstv %s409_s11 }
  0xab   :  { %v69_v22 = vadd.f32 %v68_v15, %v59_v19 }
  0xac   :  { %v95_v24 = vpop.xlane.xlu0 %94  ;;  %v105_v26 = vpop.xlane.xlu1 %104 }
  0xad   :  { %v79_v27 = vadd.f32 %v78_v20, %v69_v22  ;;  %v98_v28 = vmul.f32 %v97_v21, %v95_v24  ;;  %v108_v31 = vmul.f32 %v107_v25, %v105_v26  ;;  %v257_v21 = vstv %s411_s12 }
  0xae   :  { %v267_v25 = vstv %s413_s13 }
  0xaf   :  { %v89_v30 = vadd.f32 %v88_v23, %v79_v27 }
  0xb0   :  { %v115_v32 = vpop.xlane.xlu0 %114  ;;  %v125_v34 = vpop.xlane.xlu1 %124 }
  0xb1   :  { %v99_v35 = vadd.f32 %v98_v28, %v89_v30  ;;  %v118_v36 = vmul.f32 %v117_v29, %v115_v32  ;;  %v128_v39 = vmul.f32 %v127_v33, %v125_v34  ;;  %v277_v29 = vstv %s415_s14 }
  0xb2   :  { %v287_v33 = vstv %s417_s15 }
  0xb3   :  { %v109_v38 = vadd.f32 %v108_v31, %v99_v35 }
  0xb4   :  { %v135_v40 = vpop.xlane.xlu0 %134  ;;  %v145_v42 = vpop.xlane.xlu1 %144 }
  0xb5   :  { %v119_v43 = vadd.f32 %v118_v36, %v109_v38  ;;  %v138_v44 = vmul.f32 %v137_v37, %v135_v40  ;;  %v148_v47 = vmul.f32 %v147_v41, %v145_v42  ;;  %v297_v37 = vstv %s419_s16 }
  0xb6   :  { %v307_v41 = vstv %s421_s17 }
  0xb7   :  { %v129_v46 = vadd.f32 %v128_v39, %v119_v43 }
  0xb8   :  { %v155_v48 = vpop.xlane.xlu0 %154  ;;  %v165_v50 = vpop.xlane.xlu1 %164 }
  0xb9   :  { %v139_v51 = vadd.f32 %v138_v44, %v129_v46  ;;  %v158_v52 = vmul.f32 %v157_v45, %v155_v48  ;;  %v168_v55 = vmul.f32 %v167_v49, %v165_v50  ;;  %v317_v45 = vstv %s423_s18 }
  0xba   :  { %v327_v49 = vstv %s425_s0 }
  0xbb   :  { %v149_v54 = vadd.f32 %v148_v47, %v139_v51 }
  0xbc   :  { %v175_v56 = vpop.xlane.xlu0 %174  ;;  %v185_v58 = vpop.xlane.xlu1 %184 }
  0xbd   :  { %v159_v59 = vadd.f32 %v158_v52, %v149_v54  ;;  %v178_v60 = vmul.f32 %v177_v53, %v175_v56  ;;  %v188_v63 = vmul.f32 %v187_v57, %v185_v58  ;;  %v337_v53 = vstv %s427_s1 }
  0xbe   :  { %v347_v57 = vstv %s429_s19 }
  0xbf   :  { %v169_v62 = vadd.f32 %v168_v55, %v159_v59 }
  0xc0   :  { %v195_v2 = vpop.xlane.xlu0 %194  ;;  %v205_v0 = vpop.xlane.xlu1 %204 }
  0xc1   :  { %v179_v4 = vadd.f32 %v178_v60, %v169_v62  ;;  %v198_v5 = vmul.f32 %v197_v61, %v195_v2  ;;  %v208_v7 = vmul.f32 %v207_v3, %v205_v0  ;;  %v352_v3 = vstv %s585_s2 }
  0xc3   :  { %v189_v1 = vadd.f32 %v188_v63, %v179_v4 }
  0xc4   :  { %v215_v8 = vpop.xlane.xlu0 %214  ;;  %v225_v10 = vpop.xlane.xlu1 %224 }
  0xc5   :  { %v199_v11 = vadd.f32 %v198_v5, %v189_v1  ;;  %v218_v12 = vmul.f32 %v217_v6, %v215_v8  ;;  %v228_v15 = vmul.f32 %v227_v9, %v225_v10 }
  0xc7   :  { %v209_v14 = vadd.f32 %v208_v7, %v199_v11 }
  0xc8   :  { %v235_v16 = vpop.xlane.xlu0 %234  ;;  %v245_v18 = vpop.xlane.xlu1 %244 }
  0xc9   :  { %v219_v19 = vadd.f32 %v218_v12, %v209_v14  ;;  %v238_v20 = vmul.f32 %v237_v13, %v235_v16  ;;  %v248_v23 = vmul.f32 %v247_v17, %v245_v18 }
  0xcb   :  { %v229_v22 = vadd.f32 %v228_v15, %v219_v19 }
  0xcc   :  { %v255_v24 = vpop.xlane.xlu0 %254  ;;  %v265_v26 = vpop.xlane.xlu1 %264 }
  0xcd   :  { %v239_v27 = vadd.f32 %v238_v20, %v229_v22  ;;  %v258_v28 = vmul.f32 %v257_v21, %v255_v24  ;;  %v268_v31 = vmul.f32 %v267_v25, %v265_v26 }
  0xcf   :  { %v249_v30 = vadd.f32 %v248_v23, %v239_v27 }
  0xd0   :  { %v275_v32 = vpop.xlane.xlu0 %274  ;;  %v285_v34 = vpop.xlane.xlu1 %284 }
  0xd1   :  { %v259_v35 = vadd.f32 %v258_v28, %v249_v30  ;;  %v278_v36 = vmul.f32 %v277_v29, %v275_v32  ;;  %v288_v39 = vmul.f32 %v287_v33, %v285_v34 }
  0xd3   :  { %v269_v38 = vadd.f32 %v268_v31, %v259_v35 }
  0xd4   :  { %v295_v40 = vpop.xlane.xlu0 %294  ;;  %v305_v42 = vpop.xlane.xlu1 %304 }
  0xd5   :  { %v279_v43 = vadd.f32 %v278_v36, %v269_v38  ;;  %v298_v44 = vmul.f32 %v297_v37, %v295_v40  ;;  %v308_v47 = vmul.f32 %v307_v41, %v305_v42 }
  0xd7   :  { %v289_v46 = vadd.f32 %v288_v39, %v279_v43 }
  0xd8   :  { %v315_v48 = vpop.xlane.xlu0 %314  ;;  %v325_v50 = vpop.xlane.xlu1 %324 }
  0xd9   :  { %v299_v51 = vadd.f32 %v298_v44, %v289_v46  ;;  %v318_v52 = vmul.f32 %v317_v45, %v315_v48  ;;  %v328_v55 = vmul.f32 %v327_v49, %v325_v50 }
  0xdb   :  { %v309_v54 = vadd.f32 %v308_v47, %v299_v51 }
  0xdc   :  { %v335_v56 = vpop.xlane.xlu0 %334  ;;  %v345_v58 = vpop.xlane.xlu1 %344 }
  0xdd   :  { %v319_v59 = vadd.f32 %v318_v52, %v309_v54  ;;  %v338_v60 = vmul.f32 %v337_v53, %v335_v56  ;;  %v348_v62 = vmul.f32 %v347_v57, %v345_v58 }
  0xdf   :  { %v329_v61 = vadd.f32 %v328_v55, %v319_v59 }
  0xe1   :  { %v339_v63 = vadd.f32 %v338_v60, %v329_v61 }
  0xe3   :  { %v349_v2 = vadd.f32 %v348_v62, %v339_v63 }
  0xe5   :  { %v350_v0 = vmul.f32 0.125, %v349_v2 }
  0xe7   :  { %v353_v4 = vadd.f32 %v352_v3, %v350_v0 }
  0xe9   :  { %v430_v5 = vmul.f32 -1.442695, %v353_v4 }
  0xeb   :  { %433 = vpow2.f32 %v430_v5 }
  0xf5   :  { %v434_v6 = vpop.eup %433 }
  0xf6   :  { %v357_v1 = vadd.f32 1.0, %v434_v6 }
  0xf8   :  { %435 = vrcp.f32 %v357_v1 }
 0x102   :  { %v436_v7 = vpop.eup %435 }
 0x103   :  { %361 = vst.msk [vmem:[%s586_s3] sm:$0x3] %vm360_vm0, %v436_v7 }
 0x104   :  { %366 = vsyncpa [#allocation4], 1 }

</bundles_post_ra>
